<compile_context>
chip_gen: v6e
topology: v6e:2x2x1
jax: 0.10.0
libtpu: 0.0.40
codegen_flags: <defaults>
</compile_context>

<pallas_src>
import functools

import jax
import jax.numpy as jnp
from jax.experimental import pallas as pl
from jax.experimental.pallas import tpu as pltpu


# ---------------------------------------------------------------------------
# helpers
# ---------------------------------------------------------------------------
def _round_up(x, m):
    return ((x + m - 1) // m) * m


def _pick_tile(dim_padded, candidates=(512, 256, 128)):
    for c in candidates:
        if dim_padded % c == 0:
            return c
    return dim_padded  # dim_padded is always a multiple of 128 -> unreachable


def _vmem_capacity_bytes():
    try:
        return int(pltpu.get_tpu_info().vmem_capacity_bytes)
    except Exception:
        return 64 << 20          # conservative: v7x per-TensorCore VMEM


def _vmem_policy():
    """Return (tile/residency budget, vmem_limit_bytes) per TPU generation."""
    cap = _vmem_capacity_bytes()
    if cap >= (96 << 20):        # v5e / v6e: 128 MiB VMEM per TensorCore
        return 80 << 20, 100 << 20
    # v7x-class (64 MiB per TC) or unknown: leave headroom for Mosaic scratch.
    return 28 << 20, 52 << 20


# ---------------------------------------------------------------------------
# one-time parameter preprocessing (OUTSIDE the per-forward hot path)
# ---------------------------------------------------------------------------
def prepare_layer_params(w, b, gamma=None, beta=None, *, weight_dtype=None):
    """Pad [H1, H2] weight (and the per-feature vectors) to lane multiples of
    128 and pack bias/gamma/beta as rows 0/1/2 of a single f32 [3, H2p] array.
    Zero padding is exact (padded K rows contribute 0; padded output columns
    stay 0 through ReLU and BN because gamma/beta pads are 0)."""
    h1, h2 = w.shape
    h1p, h2p = _round_up(h1, 128), _round_up(h2, 128)
    if weight_dtype is not None:
        w = w.astype(weight_dtype)
    w = jnp.pad(w, ((0, h1p - h1), (0, h2p - h2)))

    def _vec(v, fill):
        if v is None:
            v = jnp.full((h2,), fill, jnp.float32)
        v = jnp.asarray(v, jnp.float32).reshape(-1)
        return jnp.pad(v, (0, h2p - h2))

    bgb = jnp.stack([_vec(b, 0.0), _vec(gamma, 1.0), _vec(beta, 0.0)], axis=0)
    return {"w": w, "bgb": bgb, "in_dim": h1, "out_dim": h2}


def prepare_mlp_params(layer_params, out_params, *, weight_dtype=None):
    layers = [prepare_layer_params(p["w"], p["b"], p.get("gamma"),
                                   p.get("beta"), weight_dtype=weight_dtype)
              for p in layer_params]
    out = prepare_layer_params(out_params["w"], out_params["b"],
                               weight_dtype=weight_dtype)
    return layers, out


# ---------------------------------------------------------------------------
# fully fused MLP kernel: all layers in one pallas_call, weights VMEM-resident
# refs = (x, w_0, bgb_0, ..., w_L, bgb_L, out);  layer L = final nn.Linear
# ---------------------------------------------------------------------------
def _fused_mlp_kernel(*refs, n_layers, apply_bn, eps, n_rows):
    x_ref, o_ref = refs[0], refs[-1]
    h = x_ref[...]
    for i in range(n_layers + 1):
        w = refs[1 + 2 * i][...]
        v = refs[2 + 2 * i][...].astype(jnp.float32)
        y = jnp.dot(h.astype(w.dtype), w, preferred_element_type=jnp.float32)
        y = y + v[0:1, :]
        if i < n_layers:
            y = jnp.maximum(y, 0.0)
            if apply_bn[i]:
                inv_n = 1.0 / n_rows
                mean = jnp.sum(y, axis=0, keepdims=True) * inv_n
                c = y - mean
                var = jnp.sum(c * c, axis=0, keepdims=True) * inv_n
                y = c * jax.lax.rsqrt(var + eps) * v[1:2, :] + v[2:3, :]
        h = y
    o_ref[...] = h.astype(o_ref.dtype)


def _mlp_fused_bytes(x, params, out_dtype):
    """Conservative VMEM estimate (inputs counted double-buffered)."""
    n = x.shape[0]
    total = 2 * n * x.shape[1] * x.dtype.itemsize
    max_hp = x.shape[1]
    for p in params:
        h1p, h2p = p["w"].shape
        total += 2 * h1p * h2p * p["w"].dtype.itemsize
        total += 2 * 8 * h2p * 4                       # bgb (sublane-padded)
        max_hp = max(max_hp, h2p)
    tp = params[-1]["w"].shape[1]
    total += 2 * n * tp * jnp.dtype(out_dtype).itemsize
    total += 4 * n * max_hp * 4                        # live activation temps
    return total


def _mlp_fused_call(x, layer_params, out_params, norms, eps, out_dtype,
                    vmem_limit):
    n = x.shape[0]
    params = list(layer_params) + [out_params]
    tp = out_params["w"].shape[1]

    args = [x]
    in_specs = [pl.BlockSpec(x.shape, lambda i: (0, 0))]
    flops = 0
    bytes_acc = x.size * x.dtype.itemsize
    for p in params:
        args += [p["w"], p["bgb"]]
        in_specs += [pl.BlockSpec(p["w"].shape, lambda i: (0, 0)),
                     pl.BlockSpec(p["bgb"].shape, lambda i: (0, 0))]
        flops += 2 * n * p["w"].shape[0] * p["w"].shape[1]
        bytes_acc += (p["w"].size * p["w"].dtype.itemsize
                      + p["bgb"].size * 4)
    bytes_acc += n * tp * jnp.dtype(out_dtype).itemsize

    kernel = functools.partial(
        _fused_mlp_kernel, n_layers=len(layer_params),
        apply_bn=tuple(bool(b) for b in norms), eps=eps, n_rows=n)

    return pl.pallas_call(
        kernel,
        out_shape=jax.ShapeDtypeStruct((n, tp), out_dtype),
        grid_spec=pltpu.PrefetchScalarGridSpec(
            num_scalar_prefetch=0,
            grid=(1,),
            in_specs=in_specs,
            out_specs=pl.BlockSpec((n, tp), lambda i: (0, 0)),
        ),
        compiler_params=pltpu.CompilerParams(
            dimension_semantics=("arbitrary",),
            vmem_limit_bytes=int(vmem_limit),
        ),
        cost_estimate=pl.CostEstimate(flops=int(flops), transcendentals=0,
                                      bytes_accessed=int(bytes_acc)),
    )(*args)


# ---------------------------------------------------------------------------
# per-layer fallback kernels (larger shapes): out = [BN]([ReLU](x @ W + b))
# ---------------------------------------------------------------------------
def _bn_epilogue(y, v, apply_relu, apply_bn, eps, n_rows):
    y = y + v[0:1, :]
    if apply_relu:
        y = jnp.maximum(y, 0.0)
    if apply_bn:
        inv_n = 1.0 / n_rows
        mean = jnp.sum(y, axis=0, keepdims=True) * inv_n
        c = y - mean
        var = jnp.sum(c * c, axis=0, keepdims=True) * inv_n
        y = c * jax.lax.rsqrt(var + eps) * v[1:2, :] + v[2:3, :]
    return y


def _linear_resident_kernel(x_ref, w_ref, v_ref, o_ref, *, n_rows, apply_relu,
                            apply_bn, eps):
    # x is fully resident (constant block index) -> fetched once, single pass.
    w = w_ref[...]
    y = jnp.dot(x_ref[...].astype(w.dtype), w,
                preferred_element_type=jnp.float32)
    y = _bn_epilogue(y, v_ref[...].astype(jnp.float32),
                     apply_relu, apply_bn, eps, n_rows)
    o_ref[...] = y.astype(o_ref.dtype)


def _linear_kn_kernel(x_ref, w_ref, v_ref, o_ref, *maybe_acc, n_rows,
                      apply_relu, apply_bn, eps, use_scratch):
    # f32 output: the output block itself is the resident accumulator.
    acc_ref = maybe_acc[0] if use_scratch else o_ref
    k = pl.program_id(1)

    @pl.when(k == 0)
    def _():
        acc_ref[...] = jnp.zeros_like(acc_ref)

    w = w_ref[...]
    acc_ref[...] += jnp.dot(x_ref[...].astype(w.dtype), w,
                            preferred_element_type=jnp.float32)

    @pl.when(k == pl.num_programs(1) - 1)
    def _():
        y = _bn_epilogue(acc_ref[...], v_ref[...].astype(jnp.float32),
                         apply_relu, apply_bn, eps, n_rows)
        o_ref[...] = y.astype(o_ref.dtype)


def fused_linear(x, w, bgb, *, apply_relu, apply_bn, eps=1e-5, out_dtype=None,
                 vmem_budget_bytes=None, vmem_limit_bytes=None):
    """x: [N, H1p] (lane-padded), w: [H1p, H2p] (pre-padded), bgb: [3, H2p].
    Returns [N, H2p] in the padded layout (no per-call pad/slice)."""
    n, h1p = x.shape
    assert w.shape[0] == h1p and h1p % 128 == 0
    h2p = w.shape[1]
    assert h2p % 128 == 0
    out_dtype = out_dtype or x.dtype
    if vmem_budget_bytes is None or vmem_limit_bytes is None:
        b, l = _vmem_policy()
        vmem_budget_bytes = vmem_budget_bytes or b
        vmem_limit_bytes = vmem_limit_bytes or l

    x_b = jnp.dtype(x.dtype).itemsize
    w_b = jnp.dtype(w.dtype).itemsize
    o_b = jnp.dtype(out_dtype).itemsize
    cost = pl.CostEstimate(
        flops=2 * n * h1p * h2p, transcendentals=0,
        bytes_accessed=n * h1p * x_b + h1p * h2p * w_b + n * h2p * o_b)

    # ---- Path A: x fully resident, single K pass (no accumulator, no re-DMA)
    tn = _pick_tile(h2p)

    def resident_cost(tn_):
        return (n * h1p * x_b + 2 * h1p * tn_ * w_b + 2 * 8 * tn_ * 4
                + 2 * n * tn_ * o_b + 2 * n * tn_ * 4)

    tn_r = tn
    while resident_cost(tn_r) > vmem_budget_bytes and tn_r > 128:
        tn_r //= 2
    if resident_cost(tn_r) <= vmem_budget_bytes:
        kernel = functools.partial(_linear_resident_kernel, n_rows=n,
                                   apply_relu=apply_relu, apply_bn=apply_bn,
                                   eps=eps)
        return pl.pallas_call(
            kernel,
            out_shape=jax.ShapeDtypeStruct((n, h2p), out_dtype),
            grid_spec=pltpu.PrefetchScalarGridSpec(
                num_scalar_prefetch=0,
                grid=(h2p // tn_r,),
                in_specs=[
                    pl.BlockSpec((n, h1p), lambda j: (0, 0)),     # x resident
                    pl.BlockSpec((h1p, tn_r), lambda j: (0, j)),  # w tile
                    pl.BlockSpec((3, tn_r), lambda j: (0, j)),    # bias/g/beta
                ],
                out_specs=pl.BlockSpec((n, tn_r), lambda j: (0, j)),
            ),
            compiler_params=pltpu.CompilerParams(
                dimension_semantics=("parallel",),
                vmem_limit_bytes=int(vmem_limit_bytes)),
            cost_estimate=cost,
        )(x, w, bgb)

    # ---- Path B: K-tiled; full batch resident per output tile (exact BN).
    tk = _pick_tile(h1p)
    use_scratch = jnp.dtype(out_dtype) != jnp.dtype(jnp.float32)

    def kn_cost(tk_, tn_):
        c = (2 * n * tk_ * x_b + 2 * tk_ * tn_ * w_b + 2 * 8 * tn_ * 4
             + 2 * n * tn_ * o_b)
        if use_scratch:
            c += n * tn_ * 4
        return c

    while kn_cost(tk, tn) > vmem_budget_bytes and (tk > 128 or tn > 128):
        if tk > 128:
            tk //= 2
        else:
            tn //= 2
    # TODO(synk): if N is so large that even tk=tn=128 exceeds the budget, a
    # two-pass BN (N-tiled matmul with per-column sum/sumsq scratch + a
    # normalize pass) would degrade gracefully instead of risking VMEM spills.

    scratch = [pltpu.VMEM((n, tn), jnp.float32)] if use_scratch else []
    kernel = functools.partial(_linear_kn_kernel, n_rows=n,
                               apply_relu=apply_relu, apply_bn=apply_bn,
                               eps=eps, use_scratch=use_scratch)
    return pl.pallas_call(
        kernel,
        out_shape=jax.ShapeDtypeStruct((n, h2p), out_dtype),
        grid_spec=pltpu.PrefetchScalarGridSpec(
            num_scalar_prefetch=0,
            grid=(h2p // tn, h1p // tk),
            in_specs=[
                pl.BlockSpec((n, tk), lambda j, k: (0, k)),
                pl.BlockSpec((tk, tn), lambda j, k: (k, j)),
                pl.BlockSpec((3, tn), lambda j, k: (0, j)),
            ],
            out_specs=pl.BlockSpec((n, tn), lambda j, k: (0, j)),
            scratch_shapes=scratch,
        ),
        compiler_params=pltpu.CompilerParams(
            dimension_semantics=("parallel", "arbitrary"),
            vmem_limit_bytes=int(vmem_limit_bytes)),
        cost_estimate=cost,
    )(x, w, bgb)


# ---------------------------------------------------------------------------
# module-level forward passes
# ---------------------------------------------------------------------------
def base_layer_forward(feature, prepared, *, batchnorm="none", dropout=0.0):
    # nn.Dropout(p=0.0) is the identity (base_layer default).
    # TODO(synk): non-zero dropout would need pltpu.prng_random_bits masking.
    del dropout
    n, h = feature.shape
    h1p = prepared["w"].shape[0]
    if h1p != h:
        feature = jnp.pad(feature, ((0, 0), (0, h1p - h)))
    # Faithful to the PyTorch module: the default batchnorm='none' is a truthy
    # string, so BatchNorm1d IS applied unless batchnorm is actually falsy.
    out = fused_linear(feature, prepared["w"], prepared["bgb"],
                       apply_relu=True, apply_bn=bool(batchnorm))
    return out[:, :prepared["out_dim"]]


def mlp_predictor_forward(feats, layer_params, out_params, *, norms=None,
                          eps=1e-5, out_dtype=None, fuse=True):
    """MLPPredictor.forward with prepare_mlp_params() outputs.
    Activations stay in the padded lane-dense layout between layers; the final
    output is sliced back to n_tasks exactly once."""
    n_layers = len(layer_params)
    if norms is None:
        norms = [True] * n_layers        # MLPPredictor default: BN every layer
    n, h0 = feats.shape
    h0p = layer_params[0]["w"].shape[0]
    if h0p != h0:
        feats = jnp.pad(feats, ((0, 0), (0, h0p - h0)))
    out_dtype = out_dtype or feats.dtype
    out_dim = out_params["out_dim"]

    budget, limit = _vmem_policy()
    params_all = list(layer_params) + [out_params]
    if fuse and _mlp_fused_bytes(feats, params_all, out_dtype) <= budget:
        # Whole head in ONE pallas_call, all weights resident in VMEM.
        out = _mlp_fused_call(feats, layer_params, out_params, norms, eps,
                              out_dtype, limit)
    else:
        h = feats
        for p, nrm in zip(layer_params, norms):
            h = fused_linear(h, p["w"], p["bgb"], apply_relu=True,
                             apply_bn=bool(nrm), eps=eps,
                             vmem_budget_bytes=budget,
                             vmem_limit_bytes=limit)
        out = fused_linear(h, out_params["w"], out_params["bgb"],
                           apply_relu=False, apply_bn=False,
                           out_dtype=out_dtype,
                           vmem_budget_bytes=budget, vmem_limit_bytes=limit)
    return out[:, :out_dim]


def init_linear_params(key, fan_in, fan_out, dtype=jnp.float32, with_bn=True):
    kw, kb = jax.random.split(key)
    # PyTorch nn.Linear init: U(-1/sqrt(fan_in), 1/sqrt(fan_in))
    bound = 1.0 / (fan_in ** 0.5)
    w_pt = jax.random.uniform(kw, (fan_out, fan_in), dtype, -bound, bound)
    b_pt = jax.random.uniform(kb, (fan_out,), dtype, -bound, bound)
    p = {"w": w_pt.T, "b": b_pt.reshape(1, fan_out)}   # stored as [H1, H2]
    if with_bn:
        p["gamma"] = jnp.ones((1, fan_out), dtype)     # BatchNorm1d weight
        p["beta"] = jnp.zeros((1, fan_out), dtype)     # BatchNorm1d bias
    return p


if __name__ == "__main__":
    batch, in_feats = 8, 32
    hidden_feats = [64, 32]
    n_tasks = 2

    keys = jax.random.split(jax.random.PRNGKey(0), len(hidden_feats) + 2)
    feats = jax.random.normal(keys[0], (batch, in_feats), jnp.float32)

    raw_layers = []
    fan_in = in_feats
    for i, h in enumerate(hidden_feats):
        raw_layers.append(init_linear_params(keys[1 + i], fan_in, h))
        fan_in = h
    raw_out = init_linear_params(keys[-1], fan_in, n_tasks, with_bn=False)

    # One-time parameter preprocessing (padding / packing) -- hot path free.
    layers_p, out_p = prepare_mlp_params(raw_layers, raw_out)

    # Default path: whole-MLP fused into a single pallas_call.
    fwd_fused = jax.jit(lambda f: mlp_predictor_forward(f, layers_p, out_p))
    out = jax.block_until_ready(fwd_fused(feats))
    assert out.shape == (batch, n_tasks)

    # Per-layer fallback path (resident-x fused_linear per layer).
    fwd_layers = jax.jit(
        lambda f: mlp_predictor_forward(f, layers_p, out_p, fuse=False))
    out_layers = jax.block_until_ready(fwd_layers(feats))

    # pure-JAX reference (Linear -> ReLU -> training-mode BN per layer, then a
    # plain Linear output layer)
    def ref_forward(x):
        h = x
        for p in raw_layers:
            y = jnp.maximum(h @ p["w"] + p["b"], 0.0)
            mean = y.mean(axis=0, keepdims=True)
            var = ((y - mean) ** 2).mean(axis=0, keepdims=True)
            h = (y - mean) * jax.lax.rsqrt(var + 1e-5) * p["gamma"] + p["beta"]
        return h @ raw_out["w"] + raw_out["b"]

    ref = ref_forward(feats)
    err_fused = float(jnp.abs(out - ref).max())
    err_layers = float(jnp.abs(out_layers - ref).max())
    assert jnp.allclose(out, ref, atol=1e-3, rtol=1e-3), err_fused
    assert jnp.allclose(out_layers, ref, atol=1e-3, rtol=1e-3), err_layers

    print("KERNEL_OK")
</pallas_src>

<mosaic_0001>
module attributes {stable_mosaic.version = 11 : i64} {
  func.func @_fused_mlp_kernel(%arg0: i32, %arg1: memref<8x128xf32, #tpu.memory_space<vmem>>, %arg2: memref<128x128xf32, #tpu.memory_space<vmem>>, %arg3: memref<3x128xf32, #tpu.memory_space<vmem>>, %arg4: memref<128x128xf32, #tpu.memory_space<vmem>>, %arg5: memref<3x128xf32, #tpu.memory_space<vmem>>, %arg6: memref<128x128xf32, #tpu.memory_space<vmem>>, %arg7: memref<3x128xf32, #tpu.memory_space<vmem>>, %arg8: memref<8x128xf32, #tpu.memory_space<vmem>>) attributes {dimension_semantics = [#tpu.dimension_semantics<arbitrary>], iteration_bounds = array<i64: 1>, scalar_prefetch = 0 : i64, scratch_operands = 0 : i64, tpu.core_type = #tpu.core_type<tc>, window_params = [{pipeline_mode = #tpu.pipeline_mode<synchronous>, transform_indices = @transform_0, window_bounds = array<i64: 8, 128>}, {pipeline_mode = #tpu.pipeline_mode<synchronous>, transform_indices = @transform_1, window_bounds = array<i64: 128, 128>}, {pipeline_mode = #tpu.pipeline_mode<synchronous>, transform_indices = @transform_2, window_bounds = array<i64: 3, 128>}, {pipeline_mode = #tpu.pipeline_mode<synchronous>, transform_indices = @transform_3, window_bounds = array<i64: 128, 128>}, {pipeline_mode = #tpu.pipeline_mode<synchronous>, transform_indices = @transform_4, window_bounds = array<i64: 3, 128>}, {pipeline_mode = #tpu.pipeline_mode<synchronous>, transform_indices = @transform_5, window_bounds = array<i64: 128, 128>}, {pipeline_mode = #tpu.pipeline_mode<synchronous>, transform_indices = @transform_6, window_bounds = array<i64: 3, 128>}, {pipeline_mode = #tpu.pipeline_mode<synchronous>, transform_indices = @transform_7, window_bounds = array<i64: 8, 128>}]} {
    %c0 = arith.constant 0 : index
    %c0_0 = arith.constant 0 : index
    %0 = vector.load %arg1[%c0, %c0_0] : memref<8x128xf32, #tpu.memory_space<vmem>>, vector<8x128xf32>
    %c0_1 = arith.constant 0 : index
    %c0_2 = arith.constant 0 : index
    %1 = vector.load %arg2[%c0_1, %c0_2] : memref<128x128xf32, #tpu.memory_space<vmem>>, vector<128x128xf32>
    %c0_3 = arith.constant 0 : index
    %c0_4 = arith.constant 0 : index
    %2 = vector.load %arg3[%c0_3, %c0_4] : memref<3x128xf32, #tpu.memory_space<vmem>>, vector<3x128xf32>
    %cst = arith.constant dense<0.000000e+00> : vector<8x128xf32>
    %3 = tpu.matmul %0, %1, %cst {dimension_numbers = #tpu.dot_dimension_numbers<[1], [0], [0], [1], [0, 0, 1, 1], [], []>} : vector<8x128xf32>, vector<128x128xf32>, vector<8x128xf32> -> vector<8x128xf32>
    %4 = vector.extract_strided_slice %2 {offsets = [0, 0], sizes = [1, 128], strides = [1, 1]} : vector<3x128xf32> to vector<1x128xf32>
    %5 = vector.broadcast %4 : vector<1x128xf32> to vector<8x128xf32>
    %6 = arith.addf %3, %5 : vector<8x128xf32>
    %cst_5 = arith.constant 0.000000e+00 : f32
    %7 = vector.broadcast %cst_5 : f32 to vector<8x128xf32>
    %8 = arith.maximumf %6, %7 : vector<8x128xf32>
    %cst_6 = arith.constant dense<0.000000e+00> : vector<128xf32>
    %9 = vector.multi_reduction <add>, %8, %cst_6 [0] : vector<8x128xf32> to vector<128xf32>
    %10 = vector.shape_cast %9 : vector<128xf32> to vector<1x128xf32>
    %cst_7 = arith.constant 1.250000e-01 : f32
    %11 = vector.broadcast %cst_7 : f32 to vector<1x128xf32>
    %12 = arith.mulf %10, %11 : vector<1x128xf32>
    %13 = vector.broadcast %12 : vector<1x128xf32> to vector<8x128xf32>
    %14 = arith.subf %8, %13 : vector<8x128xf32>
    %15 = arith.mulf %14, %14 : vector<8x128xf32>
    %cst_8 = arith.constant dense<0.000000e+00> : vector<128xf32>
    %16 = vector.multi_reduction <add>, %15, %cst_8 [0] : vector<8x128xf32> to vector<128xf32>
    %17 = vector.shape_cast %16 : vector<128xf32> to vector<1x128xf32>
    %cst_9 = arith.constant 1.250000e-01 : f32
    %18 = vector.broadcast %cst_9 : f32 to vector<1x128xf32>
    %19 = arith.mulf %17, %18 : vector<1x128xf32>
    %cst_10 = arith.constant 9.99999974E-6 : f32
    %20 = vector.broadcast %cst_10 : f32 to vector<1x128xf32>
    %21 = arith.addf %19, %20 : vector<1x128xf32>
    %22 = math.rsqrt %21 : vector<1x128xf32>
    %23 = vector.broadcast %22 : vector<1x128xf32> to vector<8x128xf32>
    %24 = arith.mulf %14, %23 : vector<8x128xf32>
    %25 = vector.extract_strided_slice %2 {offsets = [1, 0], sizes = [1, 128], strides = [1, 1]} : vector<3x128xf32> to vector<1x128xf32>
    %26 = vector.broadcast %25 : vector<1x128xf32> to vector<8x128xf32>
    %27 = arith.mulf %24, %26 : vector<8x128xf32>
    %28 = vector.extract_strided_slice %2 {offsets = [2, 0], sizes = [1, 128], strides = [1, 1]} : vector<3x128xf32> to vector<1x128xf32>
    %29 = vector.broadcast %28 : vector<1x128xf32> to vector<8x128xf32>
    %30 = arith.addf %27, %29 : vector<8x128xf32>
    %c0_11 = arith.constant 0 : index
    %c0_12 = arith.constant 0 : index
    %31 = vector.load %arg4[%c0_11, %c0_12] : memref<128x128xf32, #tpu.memory_space<vmem>>, vector<128x128xf32>
    %c0_13 = arith.constant 0 : index
    %c0_14 = arith.constant 0 : index
    %32 = vector.load %arg5[%c0_13, %c0_14] : memref<3x128xf32, #tpu.memory_space<vmem>>, vector<3x128xf32>
    %cst_15 = arith.constant dense<0.000000e+00> : vector<8x128xf32>
    %33 = tpu.matmul %30, %31, %cst_15 {dimension_numbers = #tpu.dot_dimension_numbers<[1], [0], [0], [1], [0, 0, 1, 1], [], []>} : vector<8x128xf32>, vector<128x128xf32>, vector<8x128xf32> -> vector<8x128xf32>
    %34 = vector.extract_strided_slice %32 {offsets = [0, 0], sizes = [1, 128], strides = [1, 1]} : vector<3x128xf32> to vector<1x128xf32>
    %35 = vector.broadcast %34 : vector<1x128xf32> to vector<8x128xf32>
    %36 = arith.addf %33, %35 : vector<8x128xf32>
    %cst_16 = arith.constant 0.000000e+00 : f32
    %37 = vector.broadcast %cst_16 : f32 to vector<8x128xf32>
    %38 = arith.maximumf %36, %37 : vector<8x128xf32>
    %cst_17 = arith.constant dense<0.000000e+00> : vector<128xf32>
    %39 = vector.multi_reduction <add>, %38, %cst_17 [0] : vector<8x128xf32> to vector<128xf32>
    %40 = vector.shape_cast %39 : vector<128xf32> to vector<1x128xf32>
    %cst_18 = arith.constant 1.250000e-01 : f32
    %41 = vector.broadcast %cst_18 : f32 to vector<1x128xf32>
    %42 = arith.mulf %40, %41 : vector<1x128xf32>
    %43 = vector.broadcast %42 : vector<1x128xf32> to vector<8x128xf32>
    %44 = arith.subf %38, %43 : vector<8x128xf32>
    %45 = arith.mulf %44, %44 : vector<8x128xf32>
    %cst_19 = arith.constant dense<0.000000e+00> : vector<128xf32>
    %46 = vector.multi_reduction <add>, %45, %cst_19 [0] : vector<8x128xf32> to vector<128xf32>
    %47 = vector.shape_cast %46 : vector<128xf32> to vector<1x128xf32>
    %cst_20 = arith.constant 1.250000e-01 : f32
    %48 = vector.broadcast %cst_20 : f32 to vector<1x128xf32>
    %49 = arith.mulf %47, %48 : vector<1x128xf32>
    %cst_21 = arith.constant 9.99999974E-6 : f32
    %50 = vector.broadcast %cst_21 : f32 to vector<1x128xf32>
    %51 = arith.addf %49, %50 : vector<1x128xf32>
    %52 = math.rsqrt %51 : vector<1x128xf32>
    %53 = vector.broadcast %52 : vector<1x128xf32> to vector<8x128xf32>
    %54 = arith.mulf %44, %53 : vector<8x128xf32>
    %55 = vector.extract_strided_slice %32 {offsets = [1, 0], sizes = [1, 128], strides = [1, 1]} : vector<3x128xf32> to vector<1x128xf32>
    %56 = vector.broadcast %55 : vector<1x128xf32> to vector<8x128xf32>
    %57 = arith.mulf %54, %56 : vector<8x128xf32>
    %58 = vector.extract_strided_slice %32 {offsets = [2, 0], sizes = [1, 128], strides = [1, 1]} : vector<3x128xf32> to vector<1x128xf32>
    %59 = vector.broadcast %58 : vector<1x128xf32> to vector<8x128xf32>
    %60 = arith.addf %57, %59 : vector<8x128xf32>
    %c0_22 = arith.constant 0 : index
    %c0_23 = arith.constant 0 : index
    %61 = vector.load %arg6[%c0_22, %c0_23] : memref<128x128xf32, #tpu.memory_space<vmem>>, vector<128x128xf32>
    %c0_24 = arith.constant 0 : index
    %c0_25 = arith.constant 0 : index
    %62 = vector.load %arg7[%c0_24, %c0_25] : memref<3x128xf32, #tpu.memory_space<vmem>>, vector<3x128xf32>
    %cst_26 = arith.constant dense<0.000000e+00> : vector<8x128xf32>
    %63 = tpu.matmul %60, %61, %cst_26 {dimension_numbers = #tpu.dot_dimension_numbers<[1], [0], [0], [1], [0, 0, 1, 1], [], []>} : vector<8x128xf32>, vector<128x128xf32>, vector<8x128xf32> -> vector<8x128xf32>
    %64 = vector.extract_strided_slice %62 {offsets = [0, 0], sizes = [1, 128], strides = [1, 1]} : vector<3x128xf32> to vector<1x128xf32>
    %65 = vector.broadcast %64 : vector<1x128xf32> to vector<8x128xf32>
    %66 = arith.addf %63, %65 : vector<8x128xf32>
    %c0_27 = arith.constant 0 : index
    %c0_28 = arith.constant 0 : index
    %67 = vector.load %arg8[%c0_27, %c0_28] : memref<8x128xf32, #tpu.memory_space<vmem>>, vector<8x128xf32>
    tpu.vector_store %arg8[%c0_27, %c0_28], %66 {strides = array<i32>} : memref<8x128xf32, #tpu.memory_space<vmem>>, vector<8x128xf32>,
    return
  }
  func.func @transform_0(%arg0: i32) -> (i32, i32) {
    %c0_i32 = arith.constant 0 : i32
    %c0_i32_0 = arith.constant 0 : i32
    %c0_i32_1 = arith.constant 0 : i32
    return %c0_i32, %c0_i32_0 : i32, i32
  }
  func.func @transform_1(%arg0: i32) -> (i32, i32) {
    %c0_i32 = arith.constant 0 : i32
    %c0_i32_0 = arith.constant 0 : i32
    %c0_i32_1 = arith.constant 0 : i32
    return %c0_i32, %c0_i32_0 : i32, i32
  }
  func.func @transform_2(%arg0: i32) -> (i32, i32) {
    %c0_i32 = arith.constant 0 : i32
    %c0_i32_0 = arith.constant 0 : i32
    %c0_i32_1 = arith.constant 0 : i32
    return %c0_i32, %c0_i32_0 : i32, i32
  }
  func.func @transform_3(%arg0: i32) -> (i32, i32) {
    %c0_i32 = arith.constant 0 : i32
    %c0_i32_0 = arith.constant 0 : i32
    %c0_i32_1 = arith.constant 0 : i32
    return %c0_i32, %c0_i32_0 : i32, i32
  }
  func.func @transform_4(%arg0: i32) -> (i32, i32) {
    %c0_i32 = arith.constant 0 : i32
    %c0_i32_0 = arith.constant 0 : i32
    %c0_i32_1 = arith.constant 0 : i32
    return %c0_i32, %c0_i32_0 : i32, i32
  }
  func.func @transform_5(%arg0: i32) -> (i32, i32) {
    %c0_i32 = arith.constant 0 : i32
    %c0_i32_0 = arith.constant 0 : i32
    %c0_i32_1 = arith.constant 0 : i32
    return %c0_i32, %c0_i32_0 : i32, i32
  }
  func.func @transform_6(%arg0: i32) -> (i32, i32) {
    %c0_i32 = arith.constant 0 : i32
    %c0_i32_0 = arith.constant 0 : i32
    %c0_i32_1 = arith.constant 0 : i32
    return %c0_i32, %c0_i32_0 : i32, i32
  }
  func.func @transform_7(%arg0: i32) -> (i32, i32) {
    %c0_i32 = arith.constant 0 : i32
    %c0_i32_0 = arith.constant 0 : i32
    %c0_i32_1 = arith.constant 0 : i32
    return %c0_i32, %c0_i32_0 : i32, i32
  }
}

</mosaic_0001>

<bundles_post_ra>
// kernel: _lambda_.1
= control target key start
LH: loop header
LB: loop body
LE: loop exit
PB: predicated region body
PF: predicated region fallthrough
CT: control target
= control target key end

     0   :  { %12 = vsyncpa [#allocation3], 0  ;;  %s782_s0 = inlined_call_operand.vmem [shape: f32[8,128], index: 0, kind: input, shape index: {}]   ;;  %s783_s1 = inlined_call_operand.hbm [shape: f32[128,128], index: 1, kind: input, shape index: {}]   ;;  %s784_s2 = inlined_call_operand.vmem [shape: f32[3,128], index: 2, kind: input, shape index: {}]   ;;  %s785_s3 = inlined_call_operand.hbm [shape: f32[128,128], index: 3, kind: input, shape index: {}]   ;;  %s786_s4 = inlined_call_operand.vmem [shape: f32[3,128], index: 4, kind: input, shape index: {}]   ;;  %s787_s5 = inlined_call_operand.hbm [shape: f32[128,128], index: 5, kind: input, shape index: {}]   ;;  %s788_s6 = inlined_call_operand.vmem [shape: f32[3,128], index: 6, kind: input, shape index: {}]   ;;  %s789_s7 = inlined_call_operand.vmem [shape: f32[8,128], index: 7, kind: output, shape index: {}]  }
   0x1   :  { %13 = vsyncpa [#allocation5], 0  ;;  %s639_s24 = smov [#allocation4]   ;;  %s640_s26 = smov [#allocation2]  }
   0x2   :  { %s35_s25 = sshll.u32 %s639_s24, 4  ;;  %s21_s27 = sshll.u32 %s640_s26, 4  ;;  %s36_s25 = int_to_ptr.vmem [resolvable:$true] %s35_s25  ;;  %s22_s27 = int_to_ptr.vmem [resolvable:$true] %s21_s27 }
   0x3   :  { %s583_s28 = scalar_lea.vmem %s36_s25, 2048  ;;  %p588_p1 = scmp.lt.s32.totalorder %s36_s25, %s36_s25 }
   0x4   :  { %p584_p0 = scmp.ne.s32.totalorder %s36_s25, %s583_s28  ;;  %p589_p2 = scmp.lt.s32.totalorder %s583_s28, %s583_s28 }
   0x6   :  { %p590_p3 = por %p589_p2, %p588_p1 }
   0x8   :  { %p591_p4 = pnand %p590_p3, %p584_p0 }
   0xa   :  { %594 = shalt.err (!%p591_p4)
}
   0xb   :  { %s641_s29 = smov 128   ;;  %s642_s30 = smov 8  }
   0xc   :  { %41 = dma.hbm_to_vmem [thread:$0]  %s785_s3, 2048, %s36_s25, [#allocation5], %s641_s29, %s641_s29, %s642_s30  }
   0xd   :  { %s603_s10 = scalar_lea.vmem %s22_s27, 2048  ;;  %p608_p6 = scmp.lt.s32.totalorder %s22_s27, %s22_s27 }
   0xe   :  { %p604_p5 = scmp.ne.s32.totalorder %s22_s27, %s603_s10  ;;  %p609_p7 = scmp.lt.s32.totalorder %s603_s10, %s603_s10 }
  0x10   :  { %p610_p8 = por %p609_p7, %p608_p6 }
  0x12   :  { %p611_p9 = pnand %p610_p8, %p604_p5 }
  0x14   :  { %614 = shalt.err (!%p611_p9)
}
  0x15   :  { %27 = dma.hbm_to_vmem [thread:$0]  %s783_s1, 2048, %s22_s27, [#allocation3], %s641_s29, %s641_s29, %s642_s30  }
  0x16   :  { %s643_s13 = smov [#allocation6]  }
  0x17   :  { %s49_s14 = sshll.u32 %s643_s13, 4  ;;  %s50_s14 = int_to_ptr.vmem [resolvable:$true] %s49_s14 }
  0x18   :  { %s623_s15 = scalar_lea.vmem %s50_s14, 2048  ;;  %p628_p11 = scmp.lt.s32.totalorder %s50_s14, %s50_s14 }
  0x19   :  { %p624_p10 = scmp.ne.s32.totalorder %s50_s14, %s623_s15  ;;  %p629_p12 = scmp.lt.s32.totalorder %s623_s15, %s623_s15 }
  0x1b   :  { %p630_p13 = por %p629_p12, %p628_p11 }
  0x1d   :  { %p631_p0 = pnand %p630_p13, %p624_p10 }
  0x1f   :  { %634 = shalt.err (!%p631_p0)
}
  0x20   :  { %55 = dma.hbm_to_vmem [thread:$0]  %s787_s5, 2048, %s50_s14, [#allocation5], %s641_s29, %s641_s29, %s642_s30  }
  0x21   :  { %635 = dma.done.wait [#allocation3], 2048  }
  0x22   :  { %636 = vsyncadd [#allocation3], 4294965248 }
  0x23   :  { %637 = dma.done.wait [#allocation5], 4096  }
  0x24   :  { %638 = vsyncadd [#allocation5], 4294963200  ;;  %v644_v0 = vmov 0.0   ;;  %vm645_vm0 = vmmov 0   ;;  %v83_v1 = vld [vmem:[#allocation2 + $0x78] sm:$0xff]  ;;  %v82_v2 = vld [vmem:[#allocation2 + $0x70] sm:$0xff]  ;;  %v85_v34 = vlaneseq }
  0x25   :  { %459 = vmatprep.subr.mxu0 %v644_v0  ;;  %491 = vmatprep.mubr.msk.f32.mxu0 %vm645_vm0, %v644_v0  ;;  %v81_v3 = vld [vmem:[#allocation2 + $0x68] sm:$0xff]  ;;  %v80_v4 = vld [vmem:[#allocation2 + $0x60] sm:$0xff]  ;;  %v79_v5 = vld [vmem:[#allocation2 + $0x58] sm:$0xff] }
  0x26   :  { %494 = vmatprep.subr.mxu1 %v644_v0  ;;  %526 = vmatprep.mubr.msk.f32.mxu1 %vm645_vm0, %v644_v0  ;;  %v78_v6 = vld [vmem:[#allocation2 + $0x50] sm:$0xff]  ;;  %v77_v7 = vld [vmem:[#allocation2 + $0x48] sm:$0xff]  ;;  %v76_v8 = vld [vmem:[#allocation2 + $0x40] sm:$0xff]  ;;  %v737_v35 = vshrl.u32 %v85_v34, 7 }
  0x27   :  { %460 = vmatpush3.msra.mxu0 %v83_v1  ;;  %v75_v9 = vld [vmem:[#allocation2 + $0x38] sm:$0xff]  ;;  %v74_v10 = vld [vmem:[#allocation2 + $0x30] sm:$0xff]  ;;  %v73_v11 = vld [vmem:[#allocation2 + $0x28] sm:$0xff] }
  0x28   :  { %461 = vmatprep.subr.mxu0 %v644_v0  ;;  %v72_v12 = vld [vmem:[#allocation2 + $0x20] sm:$0xff]  ;;  %v71_v13 = vld [vmem:[#allocation2 + $0x18] sm:$0xff]  ;;  %v70_v14 = vld [vmem:[#allocation2 + $0x10] sm:$0xff]  ;;  %v740_v36 = vsub.s32 0, %v737_v35  ;;  %v181_v60 = vsub.s32 1, %v737_v35  ;;  %v186_v61 = vsub.s32 2, %v737_v35 }
  0x29   :  { %462 = vmatpush3.msra.mxu0 %v82_v2  ;;  %v69_v15 = vld [vmem:[#allocation2 + $0x8] sm:$0xff]  ;;  %v68_v16 = vld [vmem:[#allocation2] sm:$0xff]  ;;  %v204_v18 = vld [vmem:[#allocation4 + $0x78] sm:$0xff] }
  0x2a   :  { %463 = vmatprep.subr.mxu0 %v644_v0  ;;  %v67_v17 = vld [vmem:[%s782_s0] sm:$0xff]  ;;  %495 = vmatpush3.msra.mxu1 %v204_v18  ;;  %v203_v19 = vld [vmem:[#allocation4 + $0x70] sm:$0xff]  ;;  %v202_v20 = vld [vmem:[#allocation4 + $0x68] sm:$0xff] }
  0x2b   :  { %464 = vmatpush3.msra.mxu0 %v81_v3  ;;  %496 = vmatprep.subr.mxu1 %v644_v0  ;;  %v201_v21 = vld [vmem:[#allocation4 + $0x60] sm:$0xff]  ;;  %v200_v22 = vld [vmem:[#allocation4 + $0x58] sm:$0xff]  ;;  %v199_v23 = vld [vmem:[#allocation4 + $0x50] sm:$0xff] }
  0x2c   :  { %465 = vmatprep.subr.mxu0 %v644_v0  ;;  %497 = vmatpush3.msra.mxu1 %v203_v19  ;;  %v198_v24 = vld [vmem:[#allocation4 + $0x48] sm:$0xff]  ;;  %v197_v25 = vld [vmem:[#allocation4 + $0x40] sm:$0xff]  ;;  %v196_v26 = vld [vmem:[#allocation4 + $0x38] sm:$0xff] }
  0x2d   :  { %466 = vmatpush3.msra.mxu0 %v80_v4  ;;  %498 = vmatprep.subr.mxu1 %v644_v0  ;;  %v195_v27 = vld [vmem:[#allocation4 + $0x30] sm:$0xff]  ;;  %v194_v28 = vld [vmem:[#allocation4 + $0x28] sm:$0xff]  ;;  %v193_v29 = vld [vmem:[#allocation4 + $0x20] sm:$0xff] }
  0x2e   :  { %467 = vmatprep.subr.mxu0 %v644_v0  ;;  %499 = vmatpush3.msra.mxu1 %v202_v20  ;;  %v192_v30 = vld [vmem:[#allocation4 + $0x18] sm:$0xff]  ;;  %v191_v31 = vld [vmem:[#allocation4 + $0x10] sm:$0xff]  ;;  %v190_v32 = vld [vmem:[#allocation4 + $0x8] sm:$0xff] }
  0x2f   :  { %468 = vmatpush3.msra.mxu0 %v79_v5  ;;  %500 = vmatprep.subr.mxu1 %v644_v0  ;;  %v189_v33 = vld [vmem:[#allocation4] sm:$0xff]  ;;  %v325_v5 = vld [vmem:[#allocation6 + $0x78] sm:$0xff]  ;;  %v312_v18 = vld [vmem:[#allocation6 + $0x10] sm:$0xff] }
  0x30   :  { %469 = vmatprep.subr.mxu0 %v644_v0  ;;  %501 = vmatpush3.msra.mxu1 %v201_v21  ;;  %v84_v37 = vld [vmem:[%s784_s2] sm:$0x7]  ;;  %v311_v19 = vld [vmem:[#allocation6 + $0x8] sm:$0xff] }
  0x31   :  { %470 = vmatpush3.msra.mxu0 %v78_v6  ;;  %502 = vmatprep.subr.mxu1 %v644_v0  ;;  %v88_v38 = vrot.slane %v84_v37, %v740_v36  ;;  %v182_v62 = vrot.slane %v84_v37, %v181_v60  ;;  %v187_v2 = vrot.slane %v84_v37, %v186_v61  ;;  %v324_v6 = vld [vmem:[#allocation6 + $0x70] sm:$0xff]  ;;  %v310_v20 = vld [vmem:[#allocation6] sm:$0xff] }
  0x32   :  { %471 = vmatprep.subr.mxu0 %v644_v0  ;;  %503 = vmatpush3.msra.mxu1 %v200_v22  ;;  %v205_v21 = vld [vmem:[%s786_s4] sm:$0x7] }
  0x33   :  { %472 = vmatpush3.msra.mxu0 %v77_v7  ;;  %504 = vmatprep.subr.mxu1 %v644_v0  ;;  %v323_v7 = vld [vmem:[#allocation6 + $0x68] sm:$0xff]  ;;  %v209_v22 = vrot.slane %v205_v21, %v740_v36 }
  0x34   :  { %473 = vmatprep.subr.mxu0 %v644_v0  ;;  %505 = vmatpush3.msra.mxu1 %v199_v23 }
  0x35   :  { %474 = vmatpush3.msra.mxu0 %v76_v8  ;;  %506 = vmatprep.subr.mxu1 %v644_v0  ;;  %v322_v8 = vld [vmem:[#allocation6 + $0x60] sm:$0xff] }
  0x36   :  { %475 = vmatprep.subr.mxu0 %v644_v0  ;;  %507 = vmatpush3.msra.mxu1 %v198_v24 }
  0x37   :  { %476 = vmatpush3.msra.mxu0 %v75_v9  ;;  %508 = vmatprep.subr.mxu1 %v644_v0  ;;  %v321_v9 = vld [vmem:[#allocation6 + $0x58] sm:$0xff] }
  0x38   :  { %477 = vmatprep.subr.mxu0 %v644_v0  ;;  %509 = vmatpush3.msra.mxu1 %v197_v25 }
  0x39   :  { %478 = vmatpush3.msra.mxu0 %v74_v10  ;;  %510 = vmatprep.subr.mxu1 %v644_v0  ;;  %v320_v10 = vld [vmem:[#allocation6 + $0x50] sm:$0xff] }
  0x3a   :  { %479 = vmatprep.subr.mxu0 %v644_v0  ;;  %511 = vmatpush3.msra.mxu1 %v196_v26 }
  0x3b   :  { %480 = vmatpush3.msra.mxu0 %v73_v11  ;;  %512 = vmatprep.subr.mxu1 %v644_v0  ;;  %v319_v11 = vld [vmem:[#allocation6 + $0x48] sm:$0xff] }
  0x3c   :  { %481 = vmatprep.subr.mxu0 %v644_v0  ;;  %513 = vmatpush3.msra.mxu1 %v195_v27 }
  0x3d   :  { %482 = vmatpush3.msra.mxu0 %v72_v12  ;;  %514 = vmatprep.subr.mxu1 %v644_v0  ;;  %v318_v12 = vld [vmem:[#allocation6 + $0x40] sm:$0xff] }
  0x3e   :  { %483 = vmatprep.subr.mxu0 %v644_v0  ;;  %515 = vmatpush3.msra.mxu1 %v194_v28 }
  0x3f   :  { %484 = vmatpush3.msra.mxu0 %v71_v13  ;;  %516 = vmatprep.subr.mxu1 %v644_v0  ;;  %v317_v13 = vld [vmem:[#allocation6 + $0x38] sm:$0xff] }
  0x40   :  { %485 = vmatprep.subr.mxu0 %v644_v0  ;;  %517 = vmatpush3.msra.mxu1 %v193_v29 }
  0x41   :  { %486 = vmatpush3.msra.mxu0 %v70_v14  ;;  %518 = vmatprep.subr.mxu1 %v644_v0  ;;  %v316_v14 = vld [vmem:[#allocation6 + $0x30] sm:$0xff] }
  0x42   :  { %487 = vmatprep.subr.mxu0 %v644_v0  ;;  %519 = vmatpush3.msra.mxu1 %v192_v30 }
  0x43   :  { %488 = vmatpush3.msra.mxu0 %v69_v15  ;;  %520 = vmatprep.subr.mxu1 %v644_v0  ;;  %v315_v15 = vld [vmem:[#allocation6 + $0x28] sm:$0xff] }
  0x44   :  { %489 = vmatprep.subr.mxu0 %v644_v0  ;;  %521 = vmatpush3.msra.mxu1 %v191_v31 }
  0x45   :  { %490 = vmatpush3.msra.mxu0 %v68_v16  ;;  %522 = vmatprep.subr.mxu1 %v644_v0  ;;  %v314_v16 = vld [vmem:[#allocation6 + $0x20] sm:$0xff] }
  0x46   :  { %492 = vmatmul.mubr.f32.vlgmr.msra.gmra.mxu0 %v67_v17  ;;  %529 = vmatprep.subr.mxu0 %v644_v0  ;;  %v313_v17 = vld [vmem:[#allocation6 + $0x18] sm:$0xff] }
  0x47   :  { %561 = vmatprep.mubr.msk.f32.mxu0 %vm645_vm0, %v644_v0  ;;  %523 = vmatpush3.msra.mxu1 %v190_v32 }
  0x48   :  { %524 = vmatprep.subr.mxu1 %v644_v0  ;;  %530 = vmatpush3.msra.mxu0 %v325_v5 }
  0x49   :  { %525 = vmatpush3.msra.mxu1 %v189_v33  ;;  %531 = vmatprep.subr.mxu0 %v644_v0 }
  0x4a   :  { %532 = vmatpush3.msra.mxu0 %v324_v6 }
  0x4b   :  { %533 = vmatprep.subr.mxu0 %v644_v0 }
  0x4c   :  { %534 = vmatpush3.msra.mxu0 %v323_v7 }
  0x4d   :  { %535 = vmatprep.subr.mxu0 %v644_v0 }
  0x4e   :  { %536 = vmatpush3.msra.mxu0 %v322_v8 }
  0x4f   :  { %537 = vmatprep.subr.mxu0 %v644_v0 }
  0x50   :  { %538 = vmatpush3.msra.mxu0 %v321_v9 }
  0x51   :  { %539 = vmatprep.subr.mxu0 %v644_v0 }
  0x52   :  { %540 = vmatpush3.msra.mxu0 %v320_v10 }
  0x53   :  { %541 = vmatprep.subr.mxu0 %v644_v0 }
  0x54   :  { %542 = vmatpush3.msra.mxu0 %v319_v11 }
  0x55   :  { %543 = vmatprep.subr.mxu0 %v644_v0 }
  0x56   :  { %544 = vmatpush3.msra.mxu0 %v318_v12 }
  0x57   :  { %545 = vmatprep.subr.mxu0 %v644_v0 }
  0x58   :  { %546 = vmatpush3.msra.mxu0 %v317_v13 }
  0x59   :  { %547 = vmatprep.subr.mxu0 %v644_v0 }
  0x5a   :  { %548 = vmatpush3.msra.mxu0 %v316_v14 }
  0x5b   :  { %549 = vmatprep.subr.mxu0 %v644_v0 }
  0x5c   :  { %550 = vmatpush3.msra.mxu0 %v315_v15 }
  0x5d   :  { %551 = vmatprep.subr.mxu0 %v644_v0 }
  0x5e   :  { %552 = vmatpush3.msra.mxu0 %v314_v16 }
  0x5f   :  { %553 = vmatprep.subr.mxu0 %v644_v0 }
  0x60   :  { %554 = vmatpush3.msra.mxu0 %v313_v17 }
  0x61   :  { %555 = vmatprep.subr.mxu0 %v644_v0 }
  0x62   :  { %556 = vmatpush3.msra.mxu0 %v312_v18 }
  0x63   :  { %557 = vmatprep.subr.mxu0 %v644_v0 }
  0x64   :  { %558 = vmatpush3.msra.mxu0 %v311_v19 }
  0x65   :  { %559 = vmatprep.subr.mxu0 %v644_v0 }
  0x66   :  { %560 = vmatpush3.msra.mxu0 %v310_v20 }
 0x106   :  { %v155_v39 = vpop.f32.mrf.mxu0 }
 0x107   :  { %v156_v40 = vadd.f32 %v155_v39, %v88_v38 }
 0x108   :  { %v493_v41 = vpop.f32.mrf.mxu0 }
 0x109   :  { %v159_v42 = vmax.f32 %v156_v40, 0.0 }
 0x10b   :  { %v160_v43 = vrot.slane %v159_v42, 4 }
 0x10d   :  { %v161_v44 = vadd.f32 %v160_v43, %v159_v42 }
 0x10f   :  { %v162_v45 = vrot.slane %v161_v44, 2 }
 0x111   :  { %v163_v46 = vadd.f32 %v162_v45, %v161_v44  ;;  %v303_v45 = vrot.slane %v205_v21, %v181_v60 }
 0x113   :  { %v164_v47 = vrot.slane %v163_v46, 1 }
 0x115   :  { %v165_v48 = vadd.f32 %v164_v47, %v163_v46 }
 0x117   :  { %v166_v49 = vmul.f32 0.125, %v165_v48  ;;  %v308_v48 = vrot.slane %v205_v21, %v186_v61 }
 0x119   :  { %v167_v50 = vsub.f32 %v159_v42, %v166_v49 }
 0x11b   :  { %v168_v51 = vmul.f32 %v167_v50, %v167_v50 }
 0x11d   :  { %v169_v52 = vrot.slane %v168_v51, 4 }
 0x11f   :  { %v170_v53 = vadd.f32 %v169_v52, %v168_v51  ;;  %v326_v51 = vld [vmem:[%s788_s6] sm:$0x7] }
 0x120   :  { %v330_v52 = vrot.slane %v326_v51, %v740_v36 }
 0x121   :  { %v171_v54 = vrot.slane %v170_v53, 2 }
 0x123   :  { %v172_v55 = vadd.f32 %v171_v54, %v170_v53 }
 0x125   :  { %v173_v56 = vrot.slane %v172_v55, 1 }
 0x127   :  { %v174_v57 = vadd.f32 %v173_v56, %v172_v55 }
 0x129   :  { %v175_v58 = vmul.f32 0.125, %v174_v57 }
 0x12b   :  { %v176_v59 = vadd.f32 1e-05, %v175_v58 }
 0x12d   :  { %571 = vrsqrt.f32 %v176_v59 }
 0x13a   :  { %v572_v63 = vpop.eup %571 }
 0x13b   :  { %v178_v1 = vmul.f32 %v572_v63, %v167_v50 }
 0x13d   :  { %v183_v3 = vmul.f32 %v182_v62, %v178_v1 }
 0x13f   :  { %v188_v4 = vadd.f32 %v187_v2, %v183_v3 }
 0x141   :  { %527 = vmatmul.mubr.f32.vlgmr.msra.gmra.mxu1 %v188_v4 }
 0x201   :  { %v276_v23 = vpop.f32.mrf.mxu1 }
 0x202   :  { %v277_v24 = vadd.f32 %v276_v23, %v209_v22 }
 0x203   :  { %v528_v25 = vpop.f32.mrf.mxu1 }
 0x204   :  { %v280_v26 = vmax.f32 %v277_v24, 0.0 }
 0x206   :  { %v281_v27 = vrot.slane %v280_v26, 4 }
 0x208   :  { %v282_v28 = vadd.f32 %v281_v27, %v280_v26 }
 0x20a   :  { %v283_v29 = vrot.slane %v282_v28, 2 }
 0x20c   :  { %v284_v30 = vadd.f32 %v283_v29, %v282_v28 }
 0x20e   :  { %v285_v31 = vrot.slane %v284_v30, 1 }
 0x210   :  { %v286_v32 = vadd.f32 %v285_v31, %v284_v30 }
 0x212   :  { %v287_v33 = vmul.f32 0.125, %v286_v32 }
 0x214   :  { %v288_v34 = vsub.f32 %v280_v26, %v287_v33 }
 0x216   :  { %v289_v0 = vmul.f32 %v288_v34, %v288_v34 }
 0x218   :  { %v290_v37 = vrot.slane %v289_v0, 4 }
 0x21a   :  { %v291_v38 = vadd.f32 %v290_v37, %v289_v0 }
 0x21c   :  { %v292_v39 = vrot.slane %v291_v38, 2 }
 0x21e   :  { %v293_v40 = vadd.f32 %v292_v39, %v291_v38 }
 0x220   :  { %v294_v41 = vrot.slane %v293_v40, 1 }
 0x222   :  { %v295_v42 = vadd.f32 %v294_v41, %v293_v40 }
 0x224   :  { %v296_v43 = vmul.f32 0.125, %v295_v42 }
 0x226   :  { %v297_v44 = vadd.f32 1e-05, %v296_v43 }
 0x228   :  { %573 = vrsqrt.f32 %v297_v44 }
 0x235   :  { %v574_v46 = vpop.eup %573 }
 0x236   :  { %v299_v47 = vmul.f32 %v574_v46, %v288_v34 }
 0x238   :  { %v304_v49 = vmul.f32 %v303_v45, %v299_v47 }
 0x23a   :  { %v309_v50 = vadd.f32 %v308_v48, %v304_v49 }
 0x23c   :  { %562 = vmatmul.mubr.f32.vlgmr.msra.gmra.mxu0 %v309_v50 }
 0x2fc   :  { %v397_v53 = vpop.f32.mrf.mxu0 }
 0x2fd   :  { %v398_v54 = vadd.f32 %v397_v53, %v330_v52 }
 0x2fe   :  { %v563_v55 = vpop.f32.mrf.mxu0 }
 0x2ff   :  { %401 = vst [vmem:[%s789_s7] sm:$0xff] %v398_v54 }
 0x300   :  { %406 = vsyncpa [#allocation3], 1 }
 0x301   :  { %407 = vsyncpa [#allocation5], 1 }

</bundles_post_ra>
